<compile_context>
chip_gen: v7x
topology: tpu7x:2x2x1
jax: 0.10.0
libtpu: 0.0.40
codegen_flags: <defaults>
</compile_context>

<pallas_src>
import functools

import jax
import jax.numpy as jnp
from jax.experimental import pallas as pl
from jax.experimental.pallas import tpu as pltpu

_LANE = 128  # f32 lane width


def _round_up(n, m):
    return ((n + m - 1) // m) * m


def pi_kernel(x_ref, w1_ref, b1_ref, w2_ref, b2_ref, out_ref):
    # Feature-major layout: batch on the lane axis -> lane-dense blocks.
    x = x_ref[...]                                            # (num_inputs, tb)

    # Layer 1 + ReLU: (hidden, num_inputs) @ (num_inputs, tb) -> (hidden, tb)
    h = jnp.dot(w1_ref[...], x, preferred_element_type=jnp.float32)
    h = jnp.maximum(h + b1_ref[...], 0.0)                     # bias bcast over lanes

    # Layer 2: (num_actions, hidden) @ (hidden, tb) -> (num_actions, tb)
    logits = jnp.dot(w2_ref[...], h, preferred_element_type=jnp.float32)
    logits = logits + b2_ref[...]

    num_actions = out_ref.shape[0]
    if num_actions == 2:
        # Exact 2-class softmax: p0 = sigmoid(l0 - l1), p1 = 1 - p0.
        # No reductions, no reciprocal, exactly normalized.
        p0 = 1.0 / (1.0 + jnp.exp(logits[1:2, :] - logits[0:1, :]))
        probs = jnp.concatenate([p0, 1.0 - p0], axis=0)
    else:
        # Generic numerically-stable softmax over the action (sublane) axis,
        # with an EXACT divide (no approx reciprocal).
        m = jnp.max(logits, axis=0, keepdims=True)
        e = jnp.exp(logits - m)
        probs = e / jnp.sum(e, axis=0, keepdims=True)
    out_ref[...] = probs.astype(out_ref.dtype)


def _pick_tile(batch, block_b):
    """Batch tile along the lane axis: multiple of 128 (or == batch)."""
    block_b = max(_LANE, _round_up(block_b, _LANE))
    if batch <= 2 * _LANE:
        return batch                           # single full-array tile
    # >= 2 tiles so v7x can shard the grid across both TensorCores; capped at
    # block_b for very large batches.
    return min(block_b, _round_up(pl.cdiv(batch, 2), _LANE))


def _pi_forward_feature_major(xT, w1, b1, w2, b2, block_b):
    """Core: xT (num_inputs, B) -> probsT (num_actions, B)."""
    num_inputs, batch = xT.shape
    hidden = w1.shape[0]
    num_actions = w2.shape[0]

    tb = _pick_tile(batch, block_b)
    grid = (pl.cdiv(batch, tb),)               # ragged last tile handled by Pallas

    return pl.pallas_call(
        pi_kernel,
        out_shape=jax.ShapeDtypeStruct((num_actions, batch), jnp.float32),
        grid=grid,
        in_specs=[
            # activations: tiled along the (lane) batch axis
            pl.BlockSpec((num_inputs, tb), lambda i: (0, i)),
            # weights/biases: constant block index -> resident in VMEM, DMA'd once
            pl.BlockSpec((hidden, num_inputs), lambda i: (0, 0)),
            pl.BlockSpec((hidden, 1), lambda i: (0, 0)),
            pl.BlockSpec((num_actions, hidden), lambda i: (0, 0)),
            pl.BlockSpec((num_actions, 1), lambda i: (0, 0)),
        ],
        out_specs=pl.BlockSpec((num_actions, tb), lambda i: (0, i)),
        compiler_params=pltpu.CompilerParams(
            dimension_semantics=("parallel",),  # shards batch tiles across TCs
        ),
    )(xT, w1, b1, w2, b2)


@functools.partial(jax.jit, static_argnames=("block_b",))
def pi_forward_t(xT, w1, b1, w2, b2, *, block_b=32768):
    """Feature-major fast path: xT (num_inputs, B) -> (num_actions, B)."""
    return _pi_forward_feature_major(xT, w1, b1, w2, b2, block_b)


@functools.partial(jax.jit, static_argnames=("block_b",))
def pi_forward(x, w1, b1, w2, b2, *, block_b=32768):
    """Row-major PyTorch-style interface: x (B, num_inputs) -> (B, num_actions)."""
    # One-time transposes; callers with feature-major buffers should use
    # pi_forward_t and avoid both HBM passes.
    return _pi_forward_feature_major(x.T, w1, b1, w2, b2, block_b).T


def init_pi_params(key, num_inputs, num_actions, hidden_size):
    """nn.Linear-style init; weights stored (out_features, in_features)."""
    k1, k2, k3, k4 = jax.random.split(key, 4)
    bound1 = 1.0 / jnp.sqrt(jnp.float32(num_inputs))
    bound2 = 1.0 / jnp.sqrt(jnp.float32(hidden_size))
    w1 = jax.random.uniform(k1, (hidden_size, num_inputs), jnp.float32, -bound1, bound1)
    b1 = jax.random.uniform(k2, (hidden_size, 1), jnp.float32, -bound1, bound1)
    w2 = jax.random.uniform(k3, (num_actions, hidden_size), jnp.float32, -bound2, bound2)
    b2 = jax.random.uniform(k4, (num_actions, 1), jnp.float32, -bound2, bound2)
    return w1, b1, w2, b2


if __name__ == "__main__":
    # CartPole-v1 sizes: 4 observations, 2 actions, hidden_size = 32.
    num_inputs, num_actions, hidden_size = 4, 2, 32

    key = jax.random.PRNGKey(0)
    kp, kx1, kx2, kx3 = jax.random.split(key, 4)
    w1, b1, w2, b2 = init_pi_params(kp, num_inputs, num_actions, hidden_size)

    def ref_forward(x):
        h = jnp.maximum(
            jnp.dot(x, w1.T, precision=jax.lax.Precision.HIGHEST) + b1[:, 0], 0.0)
        logits = jnp.dot(h, w2.T, precision=jax.lax.Precision.HIGHEST) + b2[:, 0]
        return jax.nn.softmax(logits, axis=-1)

    # batch=8: single full tile; 1024: two parallel tiles; 1000: ragged last tile.
    for kx, batch in ((kx1, 8), (kx2, 1024), (kx3, 1000)):
        x = jax.random.normal(kx, (batch, num_inputs), jnp.float32)
        probs = jax.block_until_ready(pi_forward(x, w1, b1, w2, b2))
        ref = ref_forward(x)
        assert probs.shape == (batch, num_actions)
        assert jnp.allclose(probs, ref, atol=1e-3, rtol=1e-3), (
            float(jnp.max(jnp.abs(probs - ref))))
        # Exact 2-class softmax -> rows sum to 1 to f32 roundoff.
        assert jnp.allclose(jnp.sum(probs, axis=-1), 1.0, atol=1e-5)

    print("KERNEL_OK")
</pallas_src>

<mosaic_0001>
module attributes {stable_mosaic.version = 11 : i64} {
  func.func @pi_kernel(%arg0: i32, %arg1: memref<4x8xf32, #tpu.memory_space<vmem>>, %arg2: memref<32x4xf32, #tpu.memory_space<vmem>>, %arg3: memref<32x1xf32, #tpu.memory_space<vmem>>, %arg4: memref<2x32xf32, #tpu.memory_space<vmem>>, %arg5: memref<2x1xf32, #tpu.memory_space<vmem>>, %arg6: memref<2x8xf32, #tpu.memory_space<vmem>>) attributes {dimension_semantics = [#tpu.dimension_semantics<parallel>], iteration_bounds = array<i64: 1>, scalar_prefetch = 0 : i64, scratch_operands = 0 : i64, tpu.core_type = #tpu.core_type<tc>, window_params = [{transform_indices = @transform_0, window_bounds = array<i64: 4, 8>}, {pipeline_mode = #tpu.pipeline_mode<synchronous>, transform_indices = @transform_1, window_bounds = array<i64: 32, 4>}, {pipeline_mode = #tpu.pipeline_mode<synchronous>, transform_indices = @transform_2, window_bounds = array<i64: 32, 1>}, {pipeline_mode = #tpu.pipeline_mode<synchronous>, transform_indices = @transform_3, window_bounds = array<i64: 2, 32>}, {pipeline_mode = #tpu.pipeline_mode<synchronous>, transform_indices = @transform_4, window_bounds = array<i64: 2, 1>}, {transform_indices = @transform_5, window_bounds = array<i64: 2, 8>}]} {
    %c0 = arith.constant 0 : index
    %c0_0 = arith.constant 0 : index
    %0 = vector.load %arg1[%c0, %c0_0] : memref<4x8xf32, #tpu.memory_space<vmem>>, vector<4x8xf32>
    %c0_1 = arith.constant 0 : index
    %c0_2 = arith.constant 0 : index
    %1 = vector.load %arg2[%c0_1, %c0_2] : memref<32x4xf32, #tpu.memory_space<vmem>>, vector<32x4xf32>
    %cst = arith.constant dense<0.000000e+00> : vector<32x8xf32>
    %2 = tpu.matmul %1, %0, %cst {dimension_numbers = #tpu.dot_dimension_numbers<[1], [0], [0], [1], [0, 0, 1, 1], [], []>} : vector<32x4xf32>, vector<4x8xf32>, vector<32x8xf32> -> vector<32x8xf32>
    %c0_3 = arith.constant 0 : index
    %c0_4 = arith.constant 0 : index
    %3 = vector.load %arg3[%c0_3, %c0_4] : memref<32x1xf32, #tpu.memory_space<vmem>>, vector<32x1xf32>
    %4 = vector.broadcast %3 : vector<32x1xf32> to vector<32x8xf32>
    %5 = arith.addf %2, %4 : vector<32x8xf32>
    %cst_5 = arith.constant 0.000000e+00 : f32
    %6 = vector.broadcast %cst_5 : f32 to vector<32x8xf32>
    %7 = arith.maximumf %5, %6 : vector<32x8xf32>
    %c0_6 = arith.constant 0 : index
    %c0_7 = arith.constant 0 : index
    %8 = vector.load %arg4[%c0_6, %c0_7] : memref<2x32xf32, #tpu.memory_space<vmem>>, vector<2x32xf32>
    %cst_8 = arith.constant dense<0.000000e+00> : vector<2x8xf32>
    %9 = tpu.matmul %8, %7, %cst_8 {dimension_numbers = #tpu.dot_dimension_numbers<[1], [0], [0], [1], [0, 0, 1, 1], [], []>} : vector<2x32xf32>, vector<32x8xf32>, vector<2x8xf32> -> vector<2x8xf32>
    %c0_9 = arith.constant 0 : index
    %c0_10 = arith.constant 0 : index
    %10 = vector.load %arg5[%c0_9, %c0_10] : memref<2x1xf32, #tpu.memory_space<vmem>>, vector<2x1xf32>
    %11 = vector.broadcast %10 : vector<2x1xf32> to vector<2x8xf32>
    %12 = arith.addf %9, %11 : vector<2x8xf32>
    %13 = vector.extract_strided_slice %12 {offsets = [1, 0], sizes = [1, 8], strides = [1, 1]} : vector<2x8xf32> to vector<1x8xf32>
    %14 = vector.extract_strided_slice %12 {offsets = [0, 0], sizes = [1, 8], strides = [1, 1]} : vector<2x8xf32> to vector<1x8xf32>
    %15 = arith.subf %13, %14 : vector<1x8xf32>
    %16 = math.exp %15 : vector<1x8xf32>
    %cst_11 = arith.constant 1.000000e+00 : f32
    %17 = vector.broadcast %cst_11 : f32 to vector<1x8xf32>
    %18 = arith.addf %17, %16 : vector<1x8xf32>
    %cst_12 = arith.constant 1.000000e+00 : f32
    %19 = vector.broadcast %cst_12 : f32 to vector<1x8xf32>
    %20 = arith.divf %19, %18 : vector<1x8xf32>
    %cst_13 = arith.constant 1.000000e+00 : f32
    %21 = vector.broadcast %cst_13 : f32 to vector<1x8xf32>
    %22 = arith.subf %21, %20 : vector<1x8xf32>
    %23 = tpu.concatenate %20, %22 in 0 : vector<1x8xf32>, vector<1x8xf32> -> vector<2x8xf32>
    %c0_14 = arith.constant 0 : index
    %c0_15 = arith.constant 0 : index
    %24 = vector.load %arg6[%c0_14, %c0_15] : memref<2x8xf32, #tpu.memory_space<vmem>>, vector<2x8xf32>
    tpu.vector_store %arg6[%c0_14, %c0_15], %23 {strides = array<i32>} : memref<2x8xf32, #tpu.memory_space<vmem>>, vector<2x8xf32>,
    return
  }
  func.func @transform_0(%arg0: i32) -> (i32, i32) {
    %c0_i32 = arith.constant 0 : i32
    %c0_i32_0 = arith.constant 0 : i32
    return %c0_i32, %arg0 : i32, i32
  }
  func.func @transform_1(%arg0: i32) -> (i32, i32) {
    %c0_i32 = arith.constant 0 : i32
    %c0_i32_0 = arith.constant 0 : i32
    %c0_i32_1 = arith.constant 0 : i32
    return %c0_i32, %c0_i32_0 : i32, i32
  }
  func.func @transform_2(%arg0: i32) -> (i32, i32) {
    %c0_i32 = arith.constant 0 : i32
    %c0_i32_0 = arith.constant 0 : i32
    %c0_i32_1 = arith.constant 0 : i32
    return %c0_i32, %c0_i32_0 : i32, i32
  }
  func.func @transform_3(%arg0: i32) -> (i32, i32) {
    %c0_i32 = arith.constant 0 : i32
    %c0_i32_0 = arith.constant 0 : i32
    %c0_i32_1 = arith.constant 0 : i32
    return %c0_i32, %c0_i32_0 : i32, i32
  }
  func.func @transform_4(%arg0: i32) -> (i32, i32) {
    %c0_i32 = arith.constant 0 : i32
    %c0_i32_0 = arith.constant 0 : i32
    %c0_i32_1 = arith.constant 0 : i32
    return %c0_i32, %c0_i32_0 : i32, i32
  }
  func.func @transform_5(%arg0: i32) -> (i32, i32) {
    %c0_i32 = arith.constant 0 : i32
    %c0_i32_0 = arith.constant 0 : i32
    return %c0_i32, %arg0 : i32, i32
  }
}

</mosaic_0001>

<bundles_post_ra>
// kernel: pi_forward.1
= control target key start
LH: loop header
LB: loop body
LE: loop exit
PB: predicated region body
PF: predicated region fallthrough
CT: control target
= control target key end

     0   :  { %vm63_vm0 = vcmask 1043456   ;;  %vm50_vm1 = vcmask 31744   ;;  %v344_v5 = vmov 0   ;;  %s428_s0 = inlined_call_operand.vmem [shape: f32[4,8], index: 0, kind: input, shape index: {}]   ;;  %s429_s1 = inlined_call_operand.vmem [shape: f32[32,4], index: 1, kind: input, shape index: {}]   ;;  %s430_s2 = inlined_call_operand.vmem [shape: f32[32,1], index: 2, kind: input, shape index: {}]   ;;  %s431_s3 = inlined_call_operand.vmem [shape: f32[2,32], index: 3, kind: input, shape index: {}]   ;;  %s432_s4 = inlined_call_operand.vmem [shape: f32[2,1], index: 4, kind: input, shape index: {}]   ;;  %s433_s5 = inlined_call_operand.hbm [shape: f32[2,8], index: 5, kind: output, shape index: {}]  }
   0x1   :  { %v21_v0 = vld [vmem:[%s428_s0] sm:$0xf]  ;;  %v23_v2 = vld [vmem:[%s429_s1 + $0x8] sm:$0xff]  ;;  %v24_v3 = vld [vmem:[%s429_s1 + $0x10] sm:$0xff]  ;;  %314 = vset.pattern.permute.xlu0 %v344_v5 }
   0x2   :  { %v22_v1 = vld [vmem:[%s429_s1] sm:$0xff]  ;;  %284 = vmatprep.subr.msk.mxu0 %vm63_vm0, %v21_v0  ;;  %v28_v6 = vld [vmem:[%s430_s2 + $0x10] sm:$0xff] }
   0x3   :  { %286 = vmatprep.mubr.msk.f32.mxu0 %vm50_vm1, %v22_v1  ;;  %v26_v4 = vld [vmem:[%s430_s2] sm:$0xff]  ;;  %285 = vmatpush3.msk.msra.mxu0 %vm63_vm0, %v21_v0 }
   0x4   :  { %287 = vmatmul.mubr.msk.f32.vlgmr.msra.gmra.mrb[0].mxu0 %vm50_vm1, %v23_v2  ;;  %32 = vperm.xlu0 %314, %v26_v4  }
   0x5   :  { %10 = vsyncpa [#allocation3], 0  ;;  %289 = vmatprep.mubr.msk.f32.mxu0 %vm50_vm1, %v24_v3  ;;  %v25_v7 = vld [vmem:[%s429_s1 + $0x18] sm:$0xff]  ;;  %v27_v8 = vld [vmem:[%s430_s2 + $0x8] sm:$0xff]  ;;  %315 = vset.pattern.permute.xlu1 %v344_v5  ;;  %v345_v11 = vmov 0.0|0.0   ;;  %vm346_vm2 = vmmov 0  }
   0x6   :  { %42 = vperm.xlu1 %315, %v28_v6   ;;  %v29_v9 = vld [vmem:[%s430_s2 + $0x18] sm:$0xff]  ;;  %v157_v10 = vld [vmem:[%s432_s4] sm:$0x3]  ;;  %303 = vmatprep.subr.bf16.mxu1 %v345_v11  ;;  %v347_v12 = vmov 0.0   ;;  %vm163_vm3 = vcmask 261120   ;;  %s348_s4 = smov [#allocation2]  }
   0x7   :  { %300 = vmatprep.mubr.msk.f32.mxu1 %vm346_vm2, %v347_v12  ;;  %v156_v31 = vld [vmem:[%s431_s3] sm:$0x3]  ;;  %s260_s12 = sshll.u32 %s348_s4, 4  ;;  %vm250_vm4 = vcmask 1040384   ;;  %vm252_vm5 = vcmask 58368   ;;  %s261_s12 = int_to_ptr.vmem [resolvable:$true] %s260_s12 }
   0x8   :  { %290 = vmatmul.mubr.msk.f32.gmra.mrb[2].mxu0 %vm50_vm1, %v25_v7  ;;  %37 = vperm.xlu0 %314, %v27_v8   ;;  %s320_s3 = scalar_lea.vmem %s261_s12, 32  ;;  %p325_p1 = scmp.lt.s32.totalorder %s261_s12, %s261_s12 }
   0x9   :  { %p321_p0 = scmp.ne.s32.totalorder %s261_s12, %s320_s3  ;;  %p326_p2 = scmp.lt.s32.totalorder %s320_s3, %s320_s3 }
   0xa   :  { %47 = vperm.xlu1 %315, %v29_v9  }
   0xb   :  { %p327_p3 = por %p326_p2, %p325_p1 }
   0xc   :  { %160 = vperm.xlu0 %314, %v157_v10  }
   0xd   :  { %p328_p4 = pnand %p327_p3, %p321_p0 }
  0x83   :  { %v33_v13 = vpop.permute.xlu0 %32 }
  0x85   :  { %v43_v14 = vpop.permute.xlu1 %42 }
  0x87   :  { %v38_v15 = vpop.permute.xlu0 %37 }
  0x89   :  { %v48_v21 = vpop.permute.xlu1 %47 }
  0x8b   :  { %v161_v32 = vpop.permute.xlu0 %160 }
  0xd7   :  { %v288_v16 = vpop.f32.mrb[0].mxu0 }
  0xd8   :  { %v139_v17 = vadd.f32 %v288_v16, %v38_v15  ;;  %v133_v18 = vpop.f32.mrb[1].mxu0 }
  0xd9   :  { %v134_v19 = vadd.f32 %v133_v18, %v33_v13 }
  0xda   :  { %v153_v20 = vmax.f32 %v139_v17, 0.0 }
  0xdb   :  { %v152_v22 = vmax.f32 %v134_v19, 0.0  ;;  %v291_v23 = vpop.f32.mrb[2].mxu0 }
  0xdc   :  { %v149_v24 = vadd.f32 %v291_v23, %v48_v21  ;;  %v143_v25 = vpop.f32.mrb[3].mxu0 }
  0xdd   :  { %v144_v26 = vadd.f32 %v143_v25, %v43_v14  ;;  %v304_v27 = vpack.c.bf16 %v153_v20, %v152_v22 }
  0xde   :  { %v155_v28 = vmax.f32 %v149_v24, 0.0 }
  0xdf   :  { %v154_v29 = vmax.f32 %v144_v26, 0.0  ;;  %305 = vmatpush3.bf16.msra.mxu1 %v304_v27 }
  0xe0   :  { %306 = vmatprep.subr.bf16.mxu1 %v345_v11 }
  0xe1   :  { %v307_v30 = vpack.c.bf16 %v155_v28, %v154_v29 }
  0xe3   :  { %308 = vmatpush3.bf16.msra.mxu1 %v307_v30 }
  0xe6   :  { %301 = vmatmul.mubr.msk.f32.vlgmr.msra.gmra.mrb[0].mxu1 %vm163_vm3, %v156_v31 }
 0x1b9   :  { %v233_v33 = vpop.f32.mrb[0].mxu1 }
 0x1ba   :  { %v234_v34 = vadd.f32 %v233_v33, %v161_v32  ;;  %v302_v35 = vpop.f32.mrb[1].mxu1 }
 0x1bc   :  { %v238_v36 = vrot.slane %v234_v34, 7 }
 0x1be   :  { %v240_v37 = vsub.f32 %v234_v34, %v238_v36 }
 0x1c0   :  { %v241_v38 = vmul.f32 1.442695, %v240_v37 }
 0x1c2   :  { %316 = vpow2.f32 %v241_v38 }
 0x1cc   :  { %v317_v39 = vpop.eup %316 }
 0x1cd   :  { %v243_v40 = vadd.f32 1.0, %v317_v39 }
 0x1cf   :  { %318 = vrcp.f32 %v243_v40 }
 0x1d9   :  { %v319_v41 = vpop.eup %318 }
 0x1da   :  { %v246_v42 = vsub.f32 1.0, %v319_v41  ;;  %v248_v43 = vrot.slane %v319_v41, 1 }
 0x1dc   :  { %v251_v44 = vsel %vm250_vm4, %v248_v43, %v246_v42 }
 0x1dd   :  { %253 = vst.msk [vmem:[#allocation2] sm:$0x3] %vm252_vm5, %v251_v44 }
 0x1de   :  { %331 = shalt.err (!%p328_p4)
}
 0x1df   :  { %s332_s15 = scalar_lea.hbm %s433_s5, 32 }
 0x1e0   :  { %p333_p5 = scmp.ne.s32.totalorder %s433_s5, %s332_s15  ;;  %p336_p6 = scmp.lt.u32.totalorder %s332_s15, %s433_s5 }
 0x1e2   :  { %p338_p7 = pnand %p336_p6, %p333_p5 }
 0x1e4   :  { %341 = shalt.err (!%p338_p7)
}
 0x1e5   :  { %263 = dma.vmem_to_hbm [thread:$0]  %s261_s12, 32, %s433_s5, [#allocation3]  }
 0x1e6   :  { %342 = dma.done.wait [#allocation3], 32  }
 0x1e7   :  { %343 = vsyncadd [#allocation3], 4294967264 }
 0x1e8   :  { %267 = vsyncpa [#allocation3], 1 }

</bundles_post_ra>
